<compile_context>
chip_gen: v7x
topology: tpu7x:2x2x1
jax: 0.10.0
libtpu: 0.0.40
codegen_flags: <defaults>
</compile_context>

<pallas_src>
import jax
import jax.numpy as jnp
from jax import lax
from jax.experimental import pallas as pl
from jax.experimental.pallas import tpu as pltpu

EPS = 1e-8

_TARGET_BLOCK_BYTES = 2 * 1024 * 1024   # per input per grid block
_MIN_BLOCK_BYTES = 1 * 1024 * 1024      # don't shrink blocks below this for grid-splitting
_MIN_GRID = 8                           # prefer >= 8 blocks (megacore / v7x 2-TC split)
_TARGET_CHUNK_ELEMS = 4096              # ~4 vregs of f32 per intermediate per chunk


def _cdiv(a, b):
    return -(-a // b)


def _round_down(x, m):
    return (x // m) * m


def _round_up(x, m):
    return _cdiv(x, m) * m


def _make_mld_kernel(*, n_rows, rows_per_block, row_chunk, n_cols, col_chunk,
                     ragged_rows, approx_reciprocal, unroll):
    """Kernel over one (rows_per_block, n_cols) block of student/teacher logits."""
    n_row_chunks = rows_per_block // row_chunk

    def kernel(s_ref, t_ref, o_ref):
        blk = pl.program_id(0)

        def chunk_loss(xs, xt):
            xs = xs.astype(jnp.float32)
            xt = xt.astype(jnp.float32)
            e_s = jnp.exp(-jnp.abs(xs))
            e_t = jnp.exp(-jnp.abs(xt))
            # inv does double duty: sigmoid(xt) and the combined log term.
            inv = pl.reciprocal(1.0 + e_t, approx=approx_reciprocal)
            t_prob = jnp.where(xt >= 0.0, inv, e_t * inv)          # sigmoid(xt)
            # softplus(xs) - softplus(xt) = max(xs,0)-max(xt,0) + log((1+e_s)*inv)
            return (t_prob * (xt - xs)
                    + (jnp.maximum(xs, 0.0) - jnp.maximum(xt, 0.0))
                    + jnp.log((1.0 + e_s) * inv))

        # Static Python loop over column chunks (C is static, so the ragged
        # last chunk just gets a smaller static width — no scatter/concat).
        for c0 in range(0, n_cols, col_chunk):
            w = min(col_chunk, n_cols - c0)
            if ragged_rows:
                # Hoisted out of the row loop (JAX does not CSE broadcasts).
                row_ids = lax.broadcasted_iota(jnp.int32, (row_chunk, w), 0)

            def body(r, acc):
                r0 = pl.multiple_of(r * row_chunk, row_chunk)
                xs = s_ref[pl.ds(r0, row_chunk), pl.ds(c0, w)]
                xt = t_ref[pl.ds(r0, row_chunk), pl.ds(c0, w)]
                loss = chunk_loss(xs, xt)
                if ragged_rows:
                    # Rows past N in the (Pallas-padded) edge block hold
                    # garbage; a select after the math zeroes them (handles
                    # inf/NaN garbage safely).
                    lim = n_rows - blk * rows_per_block - r0
                    loss = jnp.where(row_ids < lim, loss, 0.0)
                return acc + loss

            acc = lax.fori_loop(0, n_row_chunks, body,
                                jnp.zeros((row_chunk, w), jnp.float32),
                                unroll=unroll)
            # Cheap sublane reduce once per column chunk; the tiny (1, w)
            # partial goes to the per-block output row.
            o_ref[0, :, pl.ds(c0, w)] = jnp.sum(acc, axis=0, keepdims=True)

    return kernel


def mld_loss(student, teacher, reduction="batchmean", *, approx_reciprocal=False):
    """MLD loss matching the PyTorch module's forward (sum of two KLDivLoss terms)."""
    assert student.shape == teacher.shape and student.ndim == 2
    assert student.dtype == teacher.dtype
    N, C = student.shape
    itemsize = jnp.dtype(student.dtype).itemsize
    # Packed sub-32-bit dtypes (bf16, ...) want row chunks in units of 16/32 rows.
    sublane = 8 * max(1, 4 // itemsize)

    if N <= sublane:
        rows_per_block = N           # full-dim block: exempt from the 8-row rule
        row_chunk = N
    else:
        row_chunk = sublane
        row_bytes = _round_up(C, 128) * itemsize          # VMEM bytes per row
        by_bytes = max(row_chunk,
                       _round_down(_TARGET_BLOCK_BYTES // row_bytes, row_chunk))
        rows_per_block = min(by_bytes, _round_down(N, row_chunk))
        # Expose >= _MIN_GRID blocks for the multi-core split, but only if the
        # blocks stay big enough that the ~0.35us per-step overhead is noise.
        alt = _round_down(_cdiv(N, _MIN_GRID), row_chunk)
        if alt >= row_chunk and alt * row_bytes >= _MIN_BLOCK_BYTES:
            rows_per_block = min(rows_per_block, alt)

    num_blocks = _cdiv(N, rows_per_block)
    ragged_rows = (N % rows_per_block) != 0
    col_chunk = max(128, _round_down(_TARGET_CHUNK_ELEMS // row_chunk, 128))
    n_row_chunks = rows_per_block // row_chunk
    unroll = 2 if n_row_chunks >= 2 else 1

    kernel = _make_mld_kernel(
        n_rows=N, rows_per_block=rows_per_block, row_chunk=row_chunk,
        n_cols=C, col_chunk=col_chunk, ragged_rows=ragged_rows,
        approx_reciprocal=approx_reciprocal, unroll=unroll)

    partials = pl.pallas_call(
        kernel,
        out_shape=jax.ShapeDtypeStruct((num_blocks, 1, C), jnp.float32),
        grid=(num_blocks,),
        in_specs=[
            pl.BlockSpec((rows_per_block, C), lambda i: (i, 0)),
            pl.BlockSpec((rows_per_block, C), lambda i: (i, 0)),
        ],
        out_specs=pl.BlockSpec((1, 1, C), lambda i: (i, 0, 0)),
        compiler_params=pltpu.CompilerParams(
            dimension_semantics=("parallel",)),
    )(student, teacher)

    total = jnp.sum(partials)
    if reduction == "sum":
        return total
    if reduction == "batchmean":
        return total / N
    if reduction == "mean":
        return total / (N * C)
    raise AttributeError(reduction)


def mld_ref(student, teacher, reduction="batchmean"):
    """Pure-JAX reference mirroring the PyTorch module (clamp + log form)."""
    N, C = student.shape
    s = jnp.clip(jax.nn.sigmoid(student), EPS, 1.0 - EPS)
    t = jnp.clip(jax.nn.sigmoid(teacher), EPS, 1.0 - EPS)
    loss = t * (jnp.log(t) - jnp.log(s)) + (1.0 - t) * (
        jnp.log(1.0 - t) - jnp.log(1.0 - s))
    if reduction == "sum":
        return loss.sum()
    if reduction == "batchmean":
        return loss.sum() / N
    if reduction == "mean":
        return loss.mean()
    raise AttributeError(reduction)


if __name__ == "__main__":
    key = jax.random.PRNGKey(0)
    ks = jax.random.split(key, 8)

    # 1) Tiny case matching the module's (N, C) logits interface.
    s1 = jax.random.normal(ks[0], (2, 256), jnp.float32) * 2.0
    t1 = jax.random.normal(ks[1], (2, 256), jnp.float32) * 2.0
    for red in ("batchmean", "sum", "mean"):
        out = jax.block_until_ready(mld_loss(s1, t1, reduction=red))
        ref = mld_ref(s1, t1, reduction=red)
        assert jnp.allclose(out, ref, rtol=1e-3, atol=1e-3), (red, out, ref)

    # 2) C not a multiple of 128 (ragged column chunks, no wrapper pad/copy).
    s2 = jax.random.normal(ks[2], (16, 1000), jnp.float32) * 3.0
    t2 = jax.random.normal(ks[3], (16, 1000), jnp.float32) * 3.0
    out2 = jax.block_until_ready(mld_loss(s2, t2))
    ref2 = mld_ref(s2, t2)
    assert jnp.allclose(out2, ref2, rtol=1e-3, atol=1e-3), (out2, ref2)

    # 3) N not a multiple of the row block (ragged edge block -> in-kernel mask).
    s3 = jax.random.normal(ks[4], (52, 257), jnp.float32) * 2.0
    t3 = jax.random.normal(ks[5], (52, 257), jnp.float32) * 2.0
    out3 = jax.block_until_ready(mld_loss(s3, t3, reduction="sum"))
    ref3 = mld_ref(s3, t3, reduction="sum")
    assert jnp.allclose(out3, ref3, rtol=1e-3, atol=1e-2), (out3, ref3)

    # 4) bf16 logits end-to-end (no wrapper casts; f32 compute in-kernel).
    s4 = (jax.random.normal(ks[6], (24, 320), jnp.float32) * 2.0).astype(jnp.bfloat16)
    t4 = (jax.random.normal(ks[7], (24, 320), jnp.float32) * 2.0).astype(jnp.bfloat16)
    out4 = jax.block_until_ready(mld_loss(s4, t4))
    ref4 = mld_ref(s4.astype(jnp.float32), t4.astype(jnp.float32))
    assert jnp.allclose(out4, ref4, rtol=1e-3, atol=1e-3), (out4, ref4)

    print("KERNEL_OK")
</pallas_src>

<mosaic_0001>
module attributes {stable_mosaic.version = 11 : i64} {
  func.func @kernel(%arg0: i32, %arg1: memref<2x256xf32, #tpu.memory_space<vmem>>, %arg2: memref<2x256xf32, #tpu.memory_space<vmem>>, %arg3: memref<1x1x256xf32, #tpu.memory_space<vmem>>) attributes {dimension_semantics = [#tpu.dimension_semantics<parallel>], iteration_bounds = array<i64: 1>, scalar_prefetch = 0 : i64, scratch_operands = 0 : i64, tpu.core_type = #tpu.core_type<tc>, window_params = [{transform_indices = @transform_0, window_bounds = array<i64: 2, 256>}, {transform_indices = @transform_1, window_bounds = array<i64: 2, 256>}, {transform_indices = @transform_2, window_bounds = array<i64: 1, 1, 256>}]} {
    %cst = arith.constant 0.000000e+00 : f32
    %0 = vector.broadcast %cst : f32 to vector<2x256xf32>
    %c0_i32 = arith.constant 0 : i32
    %c2_i32 = arith.constant 2 : i32
    %1 = arith.muli %c0_i32, %c2_i32 : i32
    %2 = tpu.assume_multiple %1, 2 : i32
    %3 = arith.index_cast %2 : i32 to index
    %c0 = arith.constant 0 : index
    %4 = vector.load %arg1[%3, %c0] : memref<2x256xf32, #tpu.memory_space<vmem>>, vector<2x256xf32>
    %5 = arith.index_cast %2 : i32 to index
    %c0_0 = arith.constant 0 : index
    %6 = vector.load %arg2[%5, %c0_0] : memref<2x256xf32, #tpu.memory_space<vmem>>, vector<2x256xf32>
    %7 = math.absf %4 : vector<2x256xf32>
    %cst_1 = arith.constant 0.000000e+00 : f32
    %8 = vector.broadcast %cst_1 : f32 to vector<2x256xf32>
    %9 = arith.subf %8, %7 : vector<2x256xf32>
    %10 = math.exp %9 : vector<2x256xf32>
    %11 = math.absf %6 : vector<2x256xf32>
    %cst_2 = arith.constant 0.000000e+00 : f32
    %12 = vector.broadcast %cst_2 : f32 to vector<2x256xf32>
    %13 = arith.subf %12, %11 : vector<2x256xf32>
    %14 = math.exp %13 : vector<2x256xf32>
    %cst_3 = arith.constant 1.000000e+00 : f32
    %15 = vector.broadcast %cst_3 : f32 to vector<2x256xf32>
    %16 = arith.addf %15, %14 : vector<2x256xf32>
    %17 = tpu.reciprocal %16 : vector<2x256xf32> -> vector<2x256xf32>
    %cst_4 = arith.constant 0.000000e+00 : f32
    %18 = vector.broadcast %cst_4 : f32 to vector<2x256xf32>
    %19 = arith.cmpf oge, %6, %18 : vector<2x256xf32>
    %20 = arith.mulf %14, %17 : vector<2x256xf32>
    %21 = arith.select %19, %17, %20 : vector<2x256xi1>, vector<2x256xf32>
    %22 = arith.subf %6, %4 : vector<2x256xf32>
    %23 = arith.mulf %21, %22 : vector<2x256xf32>
    %cst_5 = arith.constant 0.000000e+00 : f32
    %24 = vector.broadcast %cst_5 : f32 to vector<2x256xf32>
    %25 = arith.maximumf %4, %24 : vector<2x256xf32>
    %cst_6 = arith.constant 0.000000e+00 : f32
    %26 = vector.broadcast %cst_6 : f32 to vector<2x256xf32>
    %27 = arith.maximumf %6, %26 : vector<2x256xf32>
    %28 = arith.subf %25, %27 : vector<2x256xf32>
    %29 = arith.addf %23, %28 : vector<2x256xf32>
    %cst_7 = arith.constant 1.000000e+00 : f32
    %30 = vector.broadcast %cst_7 : f32 to vector<2x256xf32>
    %31 = arith.addf %30, %10 : vector<2x256xf32>
    %32 = arith.mulf %31, %17 : vector<2x256xf32>
    %33 = math.log %32 : vector<2x256xf32>
    %34 = arith.addf %29, %33 : vector<2x256xf32>
    %35 = arith.addf %0, %34 : vector<2x256xf32>
    %c1_i32 = arith.constant 1 : i32
    %cst_8 = arith.constant dense<0.000000e+00> : vector<256xf32>
    %36 = vector.multi_reduction <add>, %35, %cst_8 [0] : vector<2x256xf32> to vector<256xf32>
    %37 = vector.shape_cast %36 : vector<256xf32> to vector<1x256xf32>
    %c0_9 = arith.constant 0 : index
    %c0_10 = arith.constant 0 : index
    %c0_11 = arith.constant 0 : index
    %38 = vector.load %arg3[%c0_9, %c0_10, %c0_11] : memref<1x1x256xf32, #tpu.memory_space<vmem>>, vector<1x1x256xf32>
    %39 = vector.shape_cast %38 : vector<1x1x256xf32> to vector<1x256xf32>
    %40 = vector.shape_cast %37 : vector<1x256xf32> to vector<1x1x256xf32>
    tpu.vector_store %arg3[%c0_9, %c0_10, %c0_11], %40 {strides = array<i32>} : memref<1x1x256xf32, #tpu.memory_space<vmem>>, vector<1x1x256xf32>,
    return
  }
  func.func @transform_0(%arg0: i32) -> (i32, i32) {
    %c0_i32 = arith.constant 0 : i32
    %c0_i32_0 = arith.constant 0 : i32
    return %arg0, %c0_i32 : i32, i32
  }
  func.func @transform_1(%arg0: i32) -> (i32, i32) {
    %c0_i32 = arith.constant 0 : i32
    %c0_i32_0 = arith.constant 0 : i32
    return %arg0, %c0_i32 : i32, i32
  }
  func.func @transform_2(%arg0: i32) -> (i32, i32, i32) {
    %c0_i32 = arith.constant 0 : i32
    %c0_i32_0 = arith.constant 0 : i32
    %c0_i32_1 = arith.constant 0 : i32
    return %arg0, %c0_i32, %c0_i32_0 : i32, i32, i32
  }
}

</mosaic_0001>

<bundles_post_ra>
// kernel: tpu_custom_call.1
= control target key start
LH: loop header
LB: loop body
LE: loop exit
PB: predicated region body
PF: predicated region fallthrough
CT: control target
= control target key end

     0   :  { %7 = vsyncpa [#allocation3], 0  ;;  %s274_s0 = inlined_call_operand.hbm [shape: f32[2,256], index: 0, kind: input, shape index: {}]   ;;  %s275_s1 = inlined_call_operand.hbm [shape: f32[2,256], index: 1, kind: input, shape index: {}]   ;;  %s276_s2 = inlined_call_operand.hbm [shape: f32[1,1,256], index: 2, kind: output, shape index: {}]  }
   0x1   :  { %8 = vsyncpa [#allocation6], 0 }
   0x2   :  { %9 = vsyncpa [#allocation4], 0  ;;  %s218_s9 = smov [#allocation2]   ;;  %s219_s11 = smov [#allocation5]  }
   0x3   :  { %s16_s10 = sshll.u32 %s218_s9, 4  ;;  %s26_s12 = sshll.u32 %s219_s11, 4  ;;  %s17_s10 = int_to_ptr.vmem [resolvable:$true] %s16_s10  ;;  %s27_s12 = int_to_ptr.vmem [resolvable:$true] %s26_s12 }
   0x4   :  { %s146_s15 = scalar_lea.hbm %s274_s0, 64 }
   0x5   :  { %p147_p0 = scmp.ne.s32.totalorder %s274_s0, %s146_s15  ;;  %p150_p1 = scmp.lt.u32.totalorder %s146_s15, %s274_s0 }
   0x7   :  { %p152_p2 = pnand %p150_p1, %p147_p0 }
   0x9   :  { %155 = shalt.err (!%p152_p2)
}
   0xa   :  { %s156_s20 = scalar_lea.vmem %s17_s10, 64  ;;  %p161_p4 = scmp.lt.s32.totalorder %s17_s10, %s17_s10 }
   0xb   :  { %p157_p3 = scmp.ne.s32.totalorder %s17_s10, %s156_s20  ;;  %p162_p5 = scmp.lt.s32.totalorder %s156_s20, %s156_s20 }
   0xd   :  { %p163_p6 = por %p162_p5, %p161_p4 }
   0xf   :  { %p164_p7 = pnand %p163_p6, %p157_p3 }
  0x11   :  { %167 = shalt.err (!%p164_p7)
}
  0x12   :  { %19 = dma.hbm_to_vmem [thread:$0]  %s274_s0, 64, %s17_s10, [#allocation3]  }
  0x13   :  { %s168_s25 = scalar_lea.hbm %s275_s1, 64 }
  0x14   :  { %p169_p8 = scmp.ne.s32.totalorder %s275_s1, %s168_s25  ;;  %p172_p9 = scmp.lt.u32.totalorder %s168_s25, %s275_s1 }
  0x16   :  { %p174_p10 = pnand %p172_p9, %p169_p8 }
  0x18   :  { %177 = shalt.err (!%p174_p10)
}
  0x19   :  { %s178_s30 = scalar_lea.vmem %s27_s12, 64  ;;  %p183_p12 = scmp.lt.s32.totalorder %s27_s12, %s27_s12 }
  0x1a   :  { %p179_p11 = scmp.ne.s32.totalorder %s27_s12, %s178_s30  ;;  %p184_p13 = scmp.lt.s32.totalorder %s178_s30, %s178_s30 }
  0x1c   :  { %p185_p0 = por %p184_p13, %p183_p12 }
  0x1e   :  { %p186_p1 = pnand %p185_p0, %p179_p11 }
  0x20   :  { %189 = shalt.err (!%p186_p1)
}
  0x21   :  { %29 = dma.hbm_to_vmem [thread:$0]  %s275_s1, 64, %s27_s12, [#allocation6]  }
  0x22   :  { %212 = dma.done.wait [#allocation3], 64  }
  0x23   :  { %213 = vsyncadd [#allocation3], 4294967232 }
  0x24   :  { %214 = dma.done.wait [#allocation6], 64  }
  0x25   :  { %215 = vsyncadd [#allocation6], 4294967232  ;;  %v39_v0 = vld [vmem:[#allocation2] sm:$0xf]  ;;  %v42_v1 = vld [vmem:[#allocation5] sm:$0xf]  ;;  %v72_v21 = vlaneseq }
  0x26   :  { %v47_v2 = vand.u32 2147483647, %v42_v1  ;;  %v43_v3 = vand.u32 2147483647, %v39_v0  ;;  %vm53_vm0 = vcmp.ge.f32.partialorder %v42_v1, 0.0  ;;  %v56_v15 = vsub.f32 %v42_v1, %v39_v0  ;;  %s222_s1 = smov [#allocation7]  }
  0x27   :  { %v58_v16 = vmax.f32 %v39_v0, 0.0  ;;  %v59_v17 = vmax.f32 %v42_v1, 0.0  ;;  %v220_v19 = vmov 1983009808   ;;  %v73_v25 = vshrl.u32 %v72_v21, 7  ;;  %s123_s4 = sshll.u32 %s222_s1, 4  ;;  %s124_s4 = int_to_ptr.vmem [resolvable:$true] %s123_s4 }
  0x28   :  { %v48_v4 = vsub.f32 0.0, %v47_v2  ;;  %v44_v6 = vsub.f32 0.0, %v43_v3  ;;  %v70_v20 = vunpack.c.l.s4 %v220_v19  ;;  %vm79_vm1 = vcmask 1041408   ;;  %s190_s5 = scalar_lea.vmem %s124_s4, 32  ;;  %p195_p3 = scmp.lt.s32.totalorder %s124_s4, %s124_s4 }
  0x29   :  { %v60_v23 = vsub.f32 %v58_v16, %v59_v17  ;;  %v221_v40 = vmov 1966171168   ;;  %vm114_vm2 = vcmp.lt.s32.totalorder %v72_v21, 256  ;;  %p191_p2 = scmp.ne.s32.totalorder %s124_s4, %s190_s5  ;;  %p196_p4 = scmp.lt.s32.totalorder %s190_s5, %s190_s5 }
  0x2a   :  { %v49_v5 = vmul.f32 1.442695, %v48_v4  ;;  %v45_v7 = vmul.f32 1.442695, %v44_v6  ;;  %v71_v24 = vunpack.c.0.s8 %v70_v20  ;;  %v98_v41 = vunpack.c.l.s4 %v221_v40 }
  0x2b   :  { %p197_p5 = por %p196_p4, %p195_p3 }
  0x2c   :  { %138 = vpow2.f32 %v49_v5  ;;  %v74_v29 = vsub.s32 %v71_v24, %v73_v25  ;;  %v99_v46 = vunpack.c.0.s8 %v98_v41 }
  0x2d   :  { %140 = vpow2.f32 %v45_v7  ;;  %p198_p6 = pnand %p197_p5, %p191_p2 }
  0x2e   :  { %v102_v50 = vsub.s32 %v99_v46, %v73_v25 }
  0x36   :  { %v139_v8 = vpop.eup %138 }
  0x37   :  { %v51_v9 = vadd.f32 1.0, %v139_v8  ;;  %v141_v10 = vpop.eup %140 }
  0x38   :  { %v62_v11 = vadd.f32 1.0, %v141_v10 }
  0x39   :  { %142 = vrcp.f32 %v51_v9 }
  0x43   :  { %v143_v12 = vpop.eup %142 }
  0x44   :  { %v54_v13 = vmul.f32 %v143_v12, %v139_v8  ;;  %v63_v14 = vmul.f32 %v143_v12, %v62_v11 }
  0x46   :  { %144 = vlog2.f32 %v63_v14  ;;  %v55_v18 = vsel %vm53_vm0, %v143_v12, %v54_v13 }
  0x47   :  { %v57_v22 = vmul.f32 %v56_v15, %v55_v18 }
  0x49   :  { %v61_v26 = vadd.f32 %v60_v23, %v57_v22 }
  0x50   :  { %v145_v27 = vpop.eup %144 }
  0x51   :  { %v65_v28 = vmul.f32 0.6931472, %v145_v27 }
  0x53   :  { %v66_v30 = vadd.f32 %v65_v28, %v61_v26 }
  0x55   :  { %v75_v31 = vrot.slane %v66_v30, %v74_v29 }
  0x57   :  { %v76_v32 = vcombine.high %v75_v31, %v75_v31  ;;  %v80_v33 = vsel %vm79_vm1, %v75_v31, 0.0 }
  0x58   :  { %v81_v34 = vrot.slane %v80_v33, 4 }
  0x59   :  { %v87_v35 = vsel %vm79_vm1, %v76_v32, 0.0 }
  0x5a   :  { %v82_v36 = vadd.f32 %v81_v34, %v80_v33  ;;  %v88_v37 = vrot.slane %v87_v35, 4 }
  0x5c   :  { %v83_v38 = vrot.slane %v82_v36, 2  ;;  %v89_v39 = vadd.f32 %v88_v37, %v87_v35 }
  0x5e   :  { %v84_v42 = vadd.f32 %v83_v38, %v82_v36  ;;  %v90_v43 = vrot.slane %v89_v39, 2 }
  0x60   :  { %v85_v44 = vrot.slane %v84_v42, 1  ;;  %v91_v45 = vadd.f32 %v90_v43, %v89_v39 }
  0x62   :  { %v86_v47 = vadd.f32 %v85_v44, %v84_v42  ;;  %v92_v48 = vrot.slane %v91_v45, 1 }
  0x64   :  { %v93_v49 = vadd.f32 %v92_v48, %v91_v45 }
  0x66   :  { %v96_v51 = vcombine.low %v86_v47, %v93_v49 }
  0x68   :  { %v103_v52 = vrot.slane %v96_v51, %v102_v50 }
  0x6a   :  { %v110_v53 = vrot.slane %v103_v52, %v102_v50 }
  0x6c   :  { %116 = vst.msk [vmem:[#allocation7] sm:$0x3] %vm114_vm2, %v110_v53 }
  0x6d   :  { %201 = shalt.err (!%p198_p6)
}
  0x6e   :  { %s202_s8 = scalar_lea.hbm %s276_s2, 32 }
  0x6f   :  { %p203_p7 = scmp.ne.s32.totalorder %s276_s2, %s202_s8  ;;  %p206_p8 = scmp.lt.u32.totalorder %s202_s8, %s276_s2 }
  0x71   :  { %p208_p9 = pnand %p206_p8, %p203_p7 }
  0x73   :  { %211 = shalt.err (!%p208_p9)
}
  0x74   :  { %126 = dma.vmem_to_hbm [thread:$0]  %s124_s4, 32, %s276_s2, [#allocation4]  }
  0x75   :  { %216 = dma.done.wait [#allocation4], 32  }
  0x76   :  { %217 = vsyncadd [#allocation4], 4294967264 }
  0x77   :  { %130 = vsyncpa [#allocation3], 1 }
  0x78   :  { %131 = vsyncpa [#allocation6], 1 }
  0x79   :  { %132 = vsyncpa [#allocation4], 1 }

</bundles_post_ra>
